<compile_context>
chip_gen: v5e
topology: v5e:2x2
jax: 0.10.0
libtpu: 0.0.40
codegen_flags: <defaults>
</compile_context>

<pallas_src>
import functools

import jax
import jax.numpy as jnp
from jax import lax
from jax.experimental import pallas as pl
from jax.experimental.pallas import tpu as pltpu


def _round_up(x, m):
    return ((x + m - 1) // m) * m


def _rbf_v_kernel(x_ref, r_ref, s_ref, ncsq_ref, w_ref, b_ref, o_ref, *, exp_dtype):
    # x_ref    : (TB, p*D)   packed batch tile (p original rows per packed row)
    # r_ref    : (p*D, Kp)   block-diag of  2*inv2s_k * C[k, :]   (scaled centers)
    # s_ref    : (p*D, Kp)   block-diag of  -inv2s_k  (broadcast over d)
    # ncsq_ref : (1, Kp)     -||c_k||^2 * inv2s_k  (tiled p times, zero-padded)
    # w_ref    : (Kp, p)     block-diag output weights (out_dim = 1 per sub-row)
    # b_ref    : (1, 1)      scalar bias, in SMEM
    # o_ref    : (TB, p)     packed values
    hi = lax.Precision.HIGHEST
    x = x_ref[...]                                                        # (TB, pD)

    # Full exponent argument from the (nearly idle) MXU; VPU only does add/add/min.
    xc = jnp.dot(x, r_ref[...], precision=hi,
                 preferred_element_type=jnp.float32)                      # (TB, Kp)
    x2c = jnp.dot(x * x, s_ref[...], precision=hi,
                  preferred_element_type=jnp.float32)                     # (TB, Kp)
    arg = jnp.minimum(xc + x2c + ncsq_ref[...], 0.0)                      # r>=0 clamp

    phi = jnp.exp(arg.astype(exp_dtype)).astype(jnp.float32)              # EUP

    # out_dim == 1 projection per packed sub-row via block-diagonal MXU matmul.
    q = jnp.dot(phi, w_ref[...], precision=hi,
                preferred_element_type=jnp.float32)                       # (TB, p)
    o_ref[...] = q + b_ref[0, 0]


def state_value_forward(obs, params, *, block_rows=512, use_bf16_exp=False):
    """Pallas implementation of StateValue.forward(obs) -> (B, 1)."""
    obs = obs.astype(jnp.float32)
    B, D = obs.shape
    K = params["C"].shape[1]

    # ---- lane packing factor: p original rows share one 128-lane row -------
    p = max(1, min(128 // max(K, 1), max(1, 512 // max(D, 1))))
    Kp = _round_up(p * K, 128)          # packed kernel axis, lane aligned
    pad_k = Kp - p * K

    # ---- one-time constant prep (tiny parameter tensors) --------------------
    C = params["C"].reshape(K, D).astype(jnp.float32)                       # (K, D)
    inv2s = 0.5 / jnp.abs(params["sigma_square"].reshape(K).astype(jnp.float32))
    csq = jnp.sum(C * C, axis=-1)                                           # (K,)
    w = params["w"].reshape(K).astype(jnp.float32)                          # (K,)
    b = params["b"].reshape(1, 1).astype(jnp.float32)                       # (1, 1)

    r_small = C.T * (2.0 * inv2s)[None, :]                                  # (D, K)
    s_small = jnp.broadcast_to(-inv2s[None, :], (D, K))                     # (D, K)
    ncsq_small = -(csq * inv2s)                                             # (K,)

    eye_p = jnp.eye(p, dtype=jnp.float32)
    r_bd = jnp.kron(eye_p, r_small)                                         # (pD, pK)
    s_bd = jnp.kron(eye_p, s_small)                                         # (pD, pK)
    w_bd = jnp.kron(eye_p, w.reshape(K, 1))                                 # (pK, p)
    ncsq_bd = jnp.tile(ncsq_small, p)[None, :]                              # (1, pK)
    if pad_k:  # zero padding is exact: arg=0 -> phi=1 -> w=0 -> contributes 0
        r_bd = jnp.pad(r_bd, ((0, 0), (0, pad_k)))
        s_bd = jnp.pad(s_bd, ((0, 0), (0, pad_k)))
        w_bd = jnp.pad(w_bd, ((0, pad_k), (0, 0)))
        ncsq_bd = jnp.pad(ncsq_bd, ((0, 0), (0, pad_k)))

    # ---- pack the batch: (B, D) -> (Bp, p*D), sublane-aligned ---------------
    Bp = pl.cdiv(B, p)
    Bp_pad = _round_up(Bp, 8)
    rows_pad = Bp_pad * p - B
    if rows_pad:
        obs = jnp.pad(obs, ((0, rows_pad), (0, 0)))   # zero rows: benign, dropped
    x_pk = obs.reshape(Bp_pad, p * D)

    # ---- tile size: keep f32 temporaries modest; >=2 grid steps when possible
    cap = max(8, min(block_rows, ((6 * 1024 * 1024) // (Kp * 4 * 5)) // 8 * 8))
    if Bp_pad <= 8:
        TB = Bp_pad
    else:
        TB = min(cap, _round_up(pl.cdiv(Bp_pad, 2), 8))
    grid = (pl.cdiv(Bp_pad, TB),)

    pD = p * D
    cost = pl.CostEstimate(
        flops=int(Bp_pad) * (4 * pD * Kp + 2 * Kp * p + 4 * Kp + pD),
        transcendentals=int(Bp_pad) * Kp,
        bytes_accessed=int(Bp_pad) * (pD + p) * 4 + (2 * pD * Kp + Kp * (p + 1)) * 4 + 4,
    )

    rep = lambda i: (0, 0)  # replicated (constant) operands
    exp_dtype = jnp.bfloat16 if use_bf16_exp else jnp.float32

    v_pk = pl.pallas_call(
        functools.partial(_rbf_v_kernel, exp_dtype=exp_dtype),
        out_shape=jax.ShapeDtypeStruct((Bp_pad, p), jnp.float32),
        grid=grid,
        in_specs=[
            pl.BlockSpec((TB, pD), lambda i: (i, 0)),        # packed obs tile
            pl.BlockSpec((pD, Kp), rep),                     # block-diag scaled C^T
            pl.BlockSpec((pD, Kp), rep),                     # block-diag -inv2s
            pl.BlockSpec((1, Kp), rep),                      # -csq*inv2s
            pl.BlockSpec((Kp, p), rep),                      # block-diag w
            pl.BlockSpec((1, 1), rep,
                         memory_space=pltpu.MemorySpace.SMEM),  # scalar bias
        ],
        out_specs=pl.BlockSpec((TB, p), lambda i: (i, 0)),
        compiler_params=pltpu.CompilerParams(
            dimension_semantics=("parallel",),               # dual-TC sharding on v7x
        ),
        cost_estimate=cost,
    )(x_pk, r_bd, s_bd, ncsq_bd, w_bd, b)

    # Unpack: row i*p + j of the original batch is element [i, j].
    return v_pk.reshape(Bp_pad * p, 1)[:B]                   # (B, 1)


def init_params(key, obs_dim, num_kernel):
    """Deterministic synthetic init matching the PyTorch __init__ shapes (out_dim=1)."""
    k1, k2, k3, k4 = jax.random.split(key, 4)
    return {
        "C": jax.random.normal(k1, (1, num_kernel, obs_dim), jnp.float32),
        "sigma_square": jnp.abs(jax.random.normal(k2, (1, num_kernel), jnp.float32)) + 0.1,
        "w": jax.random.normal(k3, (1, 1, num_kernel), jnp.float32),
        "b": jax.random.normal(k4, (1, 1, 1), jnp.float32),
    }


def _reference_forward(obs, params):
    """Pure-JAX reference mirroring the PyTorch code exactly."""
    D = obs.shape[-1]
    diff = obs.reshape(-1, 1, D) - params["C"]                              # (B, K, D)
    r = jnp.sum(diff ** 2, axis=-1)                                         # (B, K)
    phi = jnp.exp(-r / (2.0 * jnp.abs(params["sigma_square"])))[..., None]  # (B, K, 1)
    return (params["w"] @ phi + params["b"]).squeeze(-1)                    # (B, 1)


if __name__ == "__main__":
    key = jax.random.PRNGKey(0)
    k_params, k_obs = jax.random.split(key, 2)

    obs_dim, num_kernel, batch = 8, 32, 16
    params = init_params(k_params, obs_dim, num_kernel)
    obs = jax.random.normal(k_obs, (batch, obs_dim), jnp.float32)

    v = state_value_forward(obs, params)
    v = jax.block_until_ready(v)

    v_ref = _reference_forward(obs, params)
    assert v.shape == (batch, 1), v.shape
    assert jnp.allclose(v, v_ref, atol=1e-4, rtol=1e-4), (v, v_ref)

    print("KERNEL_OK")
</pallas_src>

<mosaic_0001>
module attributes {stable_mosaic.version = 11 : i64} {
  func.func @_rbf_v_kernel(%arg0: i32, %arg1: memref<8x32xf32, #tpu.memory_space<vmem>>, %arg2: memref<32x128xf32, #tpu.memory_space<vmem>>, %arg3: memref<32x128xf32, #tpu.memory_space<vmem>>, %arg4: memref<1x128xf32, #tpu.memory_space<vmem>>, %arg5: memref<128x4xf32, #tpu.memory_space<vmem>>, %arg6: memref<1x1xf32, #tpu.memory_space<smem>>, %arg7: memref<8x4xf32, #tpu.memory_space<vmem>>) attributes {dimension_semantics = [#tpu.dimension_semantics<parallel>], iteration_bounds = array<i64: 1>, scalar_prefetch = 0 : i64, scratch_operands = 0 : i64, tpu.core_type = #tpu.core_type<tc>, window_params = [{transform_indices = @transform_0, window_bounds = array<i64: 8, 32>}, {pipeline_mode = #tpu.pipeline_mode<synchronous>, transform_indices = @transform_1, window_bounds = array<i64: 32, 128>}, {pipeline_mode = #tpu.pipeline_mode<synchronous>, transform_indices = @transform_2, window_bounds = array<i64: 32, 128>}, {pipeline_mode = #tpu.pipeline_mode<synchronous>, transform_indices = @transform_3, window_bounds = array<i64: 1, 128>}, {pipeline_mode = #tpu.pipeline_mode<synchronous>, transform_indices = @transform_4, window_bounds = array<i64: 128, 4>}, {transform_indices = @transform_5, window_bounds = array<i64: 1, 1>}, {transform_indices = @transform_6, window_bounds = array<i64: 8, 4>}]} {
    %c0 = arith.constant 0 : index
    %c0_0 = arith.constant 0 : index
    %0 = vector.load %arg1[%c0, %c0_0] : memref<8x32xf32, #tpu.memory_space<vmem>>, vector<8x32xf32>
    %c0_1 = arith.constant 0 : index
    %c0_2 = arith.constant 0 : index
    %1 = vector.load %arg2[%c0_1, %c0_2] : memref<32x128xf32, #tpu.memory_space<vmem>>, vector<32x128xf32>
    %cst = arith.constant dense<0.000000e+00> : vector<8x128xf32>
    %2 = tpu.matmul %0, %1, %cst {dimension_numbers = #tpu.dot_dimension_numbers<[1], [0], [0], [1], [0, 0, 1, 1], [], []>, precision = #tpu.contract_precision<fp32>} : vector<8x32xf32>, vector<32x128xf32>, vector<8x128xf32> -> vector<8x128xf32>
    %3 = arith.mulf %0, %0 : vector<8x32xf32>
    %c0_3 = arith.constant 0 : index
    %c0_4 = arith.constant 0 : index
    %4 = vector.load %arg3[%c0_3, %c0_4] : memref<32x128xf32, #tpu.memory_space<vmem>>, vector<32x128xf32>
    %cst_5 = arith.constant dense<0.000000e+00> : vector<8x128xf32>
    %5 = tpu.matmul %3, %4, %cst_5 {dimension_numbers = #tpu.dot_dimension_numbers<[1], [0], [0], [1], [0, 0, 1, 1], [], []>, precision = #tpu.contract_precision<fp32>} : vector<8x32xf32>, vector<32x128xf32>, vector<8x128xf32> -> vector<8x128xf32>
    %6 = arith.addf %2, %5 : vector<8x128xf32>
    %c0_6 = arith.constant 0 : index
    %c0_7 = arith.constant 0 : index
    %7 = vector.load %arg4[%c0_6, %c0_7] : memref<1x128xf32, #tpu.memory_space<vmem>>, vector<1x128xf32>
    %8 = vector.broadcast %7 : vector<1x128xf32> to vector<8x128xf32>
    %9 = arith.addf %6, %8 : vector<8x128xf32>
    %cst_8 = arith.constant 0.000000e+00 : f32
    %10 = vector.broadcast %cst_8 : f32 to vector<8x128xf32>
    %11 = arith.minimumf %9, %10 : vector<8x128xf32>
    %12 = math.exp %11 : vector<8x128xf32>
    %c0_9 = arith.constant 0 : index
    %c0_10 = arith.constant 0 : index
    %13 = vector.load %arg5[%c0_9, %c0_10] : memref<128x4xf32, #tpu.memory_space<vmem>>, vector<128x4xf32>
    %cst_11 = arith.constant dense<0.000000e+00> : vector<8x4xf32>
    %14 = tpu.matmul %12, %13, %cst_11 {dimension_numbers = #tpu.dot_dimension_numbers<[1], [0], [0], [1], [0, 0, 1, 1], [], []>, precision = #tpu.contract_precision<fp32>} : vector<8x128xf32>, vector<128x4xf32>, vector<8x4xf32> -> vector<8x4xf32>
    %c0_12 = arith.constant 0 : index
    %c0_13 = arith.constant 0 : index
    %15 = memref.load %arg6[%c0_12, %c0_13] : memref<1x1xf32, #tpu.memory_space<smem>>
    %16 = vector.broadcast %15 : f32 to vector<8x4xf32>
    %17 = arith.addf %14, %16 : vector<8x4xf32>
    %c0_14 = arith.constant 0 : index
    %c0_15 = arith.constant 0 : index
    %18 = vector.load %arg7[%c0_14, %c0_15] : memref<8x4xf32, #tpu.memory_space<vmem>>, vector<8x4xf32>
    tpu.vector_store %arg7[%c0_14, %c0_15], %17 {strides = array<i32>} : memref<8x4xf32, #tpu.memory_space<vmem>>, vector<8x4xf32>,
    return
  }
  func.func @transform_0(%arg0: i32) -> (i32, i32) {
    %c0_i32 = arith.constant 0 : i32
    %c0_i32_0 = arith.constant 0 : i32
    return %arg0, %c0_i32 : i32, i32
  }
  func.func @transform_1(%arg0: i32) -> (i32, i32) {
    %c0_i32 = arith.constant 0 : i32
    %c0_i32_0 = arith.constant 0 : i32
    %c0_i32_1 = arith.constant 0 : i32
    return %c0_i32, %c0_i32_0 : i32, i32
  }
  func.func @transform_2(%arg0: i32) -> (i32, i32) {
    %c0_i32 = arith.constant 0 : i32
    %c0_i32_0 = arith.constant 0 : i32
    %c0_i32_1 = arith.constant 0 : i32
    return %c0_i32, %c0_i32_0 : i32, i32
  }
  func.func @transform_3(%arg0: i32) -> (i32, i32) {
    %c0_i32 = arith.constant 0 : i32
    %c0_i32_0 = arith.constant 0 : i32
    %c0_i32_1 = arith.constant 0 : i32
    return %c0_i32, %c0_i32_0 : i32, i32
  }
  func.func @transform_4(%arg0: i32) -> (i32, i32) {
    %c0_i32 = arith.constant 0 : i32
    %c0_i32_0 = arith.constant 0 : i32
    %c0_i32_1 = arith.constant 0 : i32
    return %c0_i32, %c0_i32_0 : i32, i32
  }
  func.func @transform_5(%arg0: i32) -> (i32, i32) {
    %c0_i32 = arith.constant 0 : i32
    %c0_i32_0 = arith.constant 0 : i32
    %c0_i32_1 = arith.constant 0 : i32
    return %c0_i32, %c0_i32_0 : i32, i32
  }
  func.func @transform_6(%arg0: i32) -> (i32, i32) {
    %c0_i32 = arith.constant 0 : i32
    %c0_i32_0 = arith.constant 0 : i32
    return %arg0, %c0_i32 : i32, i32
  }
}

</mosaic_0001>

<bundles_post_ra>
// kernel: tpu_custom_call.1
= control target key start
LH: loop header
LB: loop body
LE: loop exit
PB: predicated region body
PF: predicated region fallthrough
CT: control target
= control target key end

     0   :  { %vm34_vm0 = vcmask 261120   ;;  %vm778_vm1 = vcmask 31744   ;;  %s1201_s2 = inlined_call_operand.vmem [shape: f32[32,128], index: 2, kind: input, shape index: {}]   ;;  %s1202_s0 = inlined_call_operand.vmem [shape: f32[8,32], index: 0, kind: input, shape index: {}]   ;;  %s1203_s1 = inlined_call_operand.vmem [shape: f32[32,128], index: 1, kind: input, shape index: {}]   ;;  %s1204_s3 = inlined_call_operand.vmem [shape: f32[1,128], index: 3, kind: input, shape index: {}]   ;;  %s1205_s4 = inlined_call_operand.vmem [shape: f32[128,4], index: 4, kind: input, shape index: {}]   ;;  %s1206_s5 = inlined_call_operand.<no memory space> [shape: f32[1,1], index: 5, kind: input, shape index: {}]   ;;  %s1207_s6 = inlined_call_operand.vmem [shape: f32[8,4], index: 6, kind: output, shape index: {}]  }
   0x1   :  { %v33_v0 = vld [vmem:[%s1201_s2 + $0x18] sm:$0xff]  ;;  %v32_v1 = vld [vmem:[%s1201_s2 + $0x10] sm:$0xff]  ;;  %v31_v2 = vld [vmem:[%s1201_s2 + $0x8] sm:$0xff] }
   0x2   :  { %v831_v3 = vand.u32 4294901760, %v33_v0  ;;  %v833_v4 = vand.u32 4294901760, %v32_v1  ;;  %v835_v5 = vand.u32 4294901760, %v31_v2  ;;  %v30_v6 = vld [vmem:[%s1201_s2] sm:$0xff]  ;;  %v28_v8 = vld [vmem:[%s1203_s1 + $0x18] sm:$0xff]  ;;  %v27_v13 = vld [vmem:[%s1203_s1 + $0x10] sm:$0xff] }
   0x3   :  { %v24_v7 = vld [vmem:[%s1202_s0] sm:$0xff]  ;;  %v846_v9 = vand.u32 4294901760, %v30_v6  ;;  %v849_v12 = vand.u32 4294901760, %v28_v8  ;;  %v26_v18 = vld [vmem:[%s1203_s1 + $0x8] sm:$0xff]  ;;  %v868_v22 = vand.u32 4294901760, %v27_v13  ;;  %v434_v62 = vld [vmem:[%s1205_s4 + $0x78] sm:$0xff] }
   0x4   :  { %v29_v10 = vmul.f32 %v24_v7, %v24_v7  ;;  %v224_v11 = vsel %vm34_vm0, %v24_v7, 0  ;;  %51 = vmatpush.msra.mxu2 %v831_v3  ;;  %v80_v14 = vsub.f32 %v33_v0, %v831_v3  ;;  %v86_v15 = vsub.f32 %v32_v1, %v833_v4  ;;  %v25_v26 = vld [vmem:[%s1203_s1] sm:$0xff]  ;;  %v433_v0 = vld [vmem:[%s1205_s4 + $0x70] sm:$0xff] }
   0x5   :  { %v857_v16 = vand.u32 4294901760, %v224_v11  ;;  %v92_v17 = vsub.f32 %v31_v2, %v835_v5  ;;  %v98_v20 = vsub.f32 %v30_v6, %v846_v9  ;;  %v866_v21 = vsub.f32 %v28_v8, %v849_v12  ;;  %339 = vmatpush.msra.mxu1 %v849_v12  ;;  %v431_v7 = vld [vmem:[%s1205_s4 + $0x60] sm:$0xff] }
   0x6   :  { %v36_v19 = vsel %vm34_vm0, %v29_v10, 0  ;;  %53 = vmatpush.msra.mxu2 %v833_v4  ;;  %v81_v23 = vand.u32 4294901760, %v80_v14  ;;  %v87_v24 = vand.u32 4294901760, %v86_v15  ;;  %v880_v30 = vand.u32 4294901760, %v26_v18 }
   0x7   :  { %v872_v25 = vand.u32 4294901760, %v36_v19  ;;  %v878_v27 = vsub.f32 %v224_v11, %v857_v16  ;;  %v93_v28 = vand.u32 4294901760, %v92_v17  ;;  %v99_v29 = vand.u32 4294901760, %v98_v20  ;;  %310 = vmatpush.msra.mxu0 %v866_v21  ;;  %341 = vmatpush.msra.mxu1 %v868_v22 }
   0x8   :  { %55 = vmatpush.msra.mxu2 %v835_v5  ;;  %v82_v31 = vsub.f32 %v80_v14, %v81_v23  ;;  %v88_v32 = vsub.f32 %v86_v15, %v87_v24  ;;  %v887_v34 = vsub.f32 %v27_v13, %v868_v22  ;;  %v889_v36 = vand.u32 4294901760, %v25_v26 }
   0x9   :  { %v59_v33 = vsub.f32 %v36_v19, %v872_v25  ;;  %v94_v35 = vsub.f32 %v92_v17, %v93_v28  ;;  %343 = vmatpush.msra.mxu1 %v880_v30  ;;  %v100_v40 = vsub.f32 %v98_v20, %v99_v29  ;;  %v248_v41 = vand.u32 4294901760, %v878_v27 }
   0xa   :  { %v83_v37 = vand.u32 4294901760, %v82_v31  ;;  %57 = vmatpush.msra.mxu2 %v846_v9  ;;  %v89_v38 = vand.u32 4294901760, %v88_v32  ;;  %313 = vmatpush.msra.mxu0 %v887_v34  ;;  %v280_v44 = vsub.f32 %v26_v18, %v880_v30  ;;  %v286_v47 = vsub.f32 %v25_v26, %v889_v36  ;;  %v429_v18 = vld [vmem:[%s1205_s4 + $0x50] sm:$0xff] }
   0xb   :  { %v60_v39 = vand.u32 4294901760, %v59_v33  ;;  %345 = vmatpush.msra.mxu1 %v889_v36  ;;  %v95_v43 = vand.u32 4294901760, %v94_v35  ;;  %v101_v46 = vand.u32 4294901760, %v100_v40  ;;  %v269_v48 = vand.u32 4294901760, %v866_v21 }
   0xc   :  { %122 = vmatpush.msrb.mxu2 %v80_v14  ;;  %84 = vmatpush.msra.mxu3 %v83_v37  ;;  %v275_v49 = vand.u32 4294901760, %v887_v34  ;;  %v281_v51 = vand.u32 4294901760, %v280_v44  ;;  %v287_v53 = vand.u32 4294901760, %v286_v47  ;;  %v249_v55 = vsub.f32 %v878_v27, %v248_v41 }
   0xd   :  { %v61_v42 = vsub.f32 %v59_v33, %v60_v39  ;;  %349 = vmatmul.f32.vlgmr.msra.gmra.mxu1 %v248_v41  ;;  %316 = vmatpush.msra.mxu0 %v280_v44  ;;  %v270_v50 = vsub.f32 %v866_v21, %v269_v48  ;;  %v929_v63 = vand.u32 4294901760, %v434_v62  ;;  %v937_v2 = vand.u32 4294901760, %v433_v0 }
   0xe   :  { %125 = vmatpush.msrb.mxu2 %v86_v15  ;;  %90 = vmatpush.msra.mxu3 %v89_v38  ;;  %v276_v52 = vsub.f32 %v887_v34, %v275_v49  ;;  %v282_v56 = vsub.f32 %v280_v44, %v281_v51  ;;  %v288_v58 = vsub.f32 %v286_v47, %v287_v53  ;;  %v250_v59 = vand.u32 4294901760, %v249_v55 }
   0xf   :  { %v62_v45 = vand.u32 4294901760, %v61_v42  ;;  %319 = vmatpush.msra.mxu0 %v286_v47  ;;  %v271_v54 = vand.u32 4294901760, %v270_v50  ;;  %v935_v1 = vsub.f32 %v434_v62, %v929_v63  ;;  %v963_v11 = vand.u32 4294901760, %v431_v7  ;;  %v425_v42 = vld [vmem:[%s1205_s4 + $0x30] sm:$0xff] }
  0x10   :  { %128 = vmatpush.msrb.mxu2 %v92_v17  ;;  %96 = vmatpush.msra.mxu3 %v95_v43  ;;  %v277_v57 = vand.u32 4294901760, %v276_v52  ;;  %v283_v60 = vand.u32 4294901760, %v282_v56  ;;  %v289_v61 = vand.u32 4294901760, %v288_v58  ;;  %v1053_v47 = vand.u32 4294901760, %v425_v42 }
  0x11   :  { %63 = vmatmul.f32.vlgmr.msra.gmra.mxu2 %v62_v45  ;;  %322 = vmatmul.f32.vlgmr.msra.gmra.mxu0 %v878_v27 }
  0x12   :  { %131 = vmatpush.msrb.mxu2 %v98_v20  ;;  %102 = vmatpush.msra.mxu3 %v101_v46 }
  0x13   :  { %104 = vmatmul.f32.vlgmr.msra.gmra.mxu3 %v872_v25  ;;  %438 = vmatpush.msrb.mxu0 %v929_v63 }
  0x14   :  { %180 = vmatpush.msra.mxu2 %v81_v23  ;;  %151 = vmatpush.msrb.mxu3 %v831_v3 }
  0x15   :  { %440 = vmatpush.msrb.mxu0 %v937_v2 }
  0x16   :  { %184 = vmatpush.msra.mxu2 %v87_v24  ;;  %153 = vmatpush.msrb.mxu3 %v833_v4  ;;  %v428_v24 = vld [vmem:[%s1205_s4 + $0x48] sm:$0xff] }
  0x18   :  { %188 = vmatpush.msra.mxu2 %v93_v28  ;;  %155 = vmatpush.msrb.mxu3 %v835_v5  ;;  %v1007_v28 = vand.u32 4294901760, %v428_v24 }
  0x19   :  { %134 = vmatmul.f32.vlgmr.msrb.gmra.mxu2 %v59_v33 }
  0x1a   :  { %192 = vmatpush.msra.mxu2 %v99_v29  ;;  %157 = vmatpush.msrb.mxu3 %v846_v9  ;;  %v1017_v33 = vsub.f32 %v428_v24, %v1007_v28 }
  0x1b   :  { %161 = vmatmul.f32.vlgmr.msrb.gmra.mxu3 %v60_v39 }
  0x1c   :  { %239 = vmatpush.msrb.mxu2 %v849_v12  ;;  %211 = vmatpush.msra.mxu3 %v831_v3  ;;  %v432_v3 = vld [vmem:[%s1205_s4 + $0x68] sm:$0xff]  ;;  %v516_v38 = vand.u32 4294901760, %v1017_v33 }
  0x1d   :  { %v948_v6 = vand.u32 4294901760, %v432_v3 }
  0x1e   :  { %241 = vmatpush.msrb.mxu2 %v868_v22  ;;  %213 = vmatpush.msra.mxu3 %v833_v4  ;;  %v480_v4 = vand.u32 4294901760, %v935_v1  ;;  %v517_v44 = vsub.f32 %v1017_v33, %v516_v38 }
  0x1f   :  { %v961_v10 = vsub.f32 %v432_v3, %v948_v6  ;;  %442 = vmatpush.msrb.mxu0 %v948_v6 }
  0x20   :  { %243 = vmatpush.msrb.mxu2 %v880_v30  ;;  %215 = vmatpush.msra.mxu3 %v835_v5  ;;  %v946_v5 = vsub.f32 %v433_v0, %v937_v2  ;;  %v481_v8 = vsub.f32 %v935_v1, %v480_v4 }
  0x21   :  { %194 = vmatmul.f32.vlgmr.msra.gmra.mxu2 %v872_v25  ;;  %v492_v15 = vand.u32 4294901760, %v961_v10  ;;  %444 = vmatpush.msrb.mxu0 %v963_v11 }
  0x22   :  { %245 = vmatpush.msrb.mxu2 %v889_v36  ;;  %217 = vmatpush.msra.mxu3 %v846_v9  ;;  %v486_v9 = vand.u32 4294901760, %v946_v5  ;;  %v482_v13 = vand.u32 4294901760, %v481_v8  ;;  %v421_v8 = vld [vmem:[%s1205_s4 + $0x10] sm:$0xff] }
  0x23   :  { %219 = vmatmul.f32.vlgmr.msra.gmra.mxu3 %v872_v25  ;;  %v493_v20 = vsub.f32 %v961_v10, %v492_v15 }
  0x24   :  { %368 = vmatpush.msra.mxu2 %v269_v48  ;;  %272 = vmatpush.msrb.mxu3 %v271_v54  ;;  %v487_v14 = vsub.f32 %v946_v5, %v486_v9  ;;  %v424_v48 = vld [vmem:[%s1205_s4 + $0x28] sm:$0xff]  ;;  %v423_v54 = vld [vmem:[%s1205_s4 + $0x20] sm:$0xff] }
  0x25   :  { %483 = vmatpush.msrb.mxu1 %v482_v13  ;;  %v494_v25 = vand.u32 4294901760, %v493_v20  ;;  %v1063_v52 = vand.u32 4294901760, %v424_v48  ;;  %v1080_v58 = vand.u32 4294901760, %v423_v54  ;;  %v420_v20 = vld [vmem:[%s1205_s4 + $0x8] sm:$0xff] }
  0x26   :  { %372 = vmatpush.msra.mxu2 %v275_v49  ;;  %278 = vmatpush.msrb.mxu3 %v277_v57  ;;  %v488_v19 = vand.u32 4294901760, %v487_v14  ;;  %v518_v49 = vand.u32 4294901760, %v517_v44 }
  0x27   :  { %v1078_v57 = vsub.f32 %v424_v48, %v1063_v52  ;;  %v1091_v0 = vsub.f32 %v423_v54, %v1080_v58 }
  0x28   :  { %376 = vmatpush.msra.mxu2 %v281_v51  ;;  %284 = vmatpush.msrb.mxu3 %v283_v60  ;;  %v422_v60 = vld [vmem:[%s1205_s4 + $0x18] sm:$0xff] }
  0x29   :  { %251 = vmatmul.f32.vlgmr.msrb.gmra.mxu2 %v250_v59  ;;  %489 = vmatpush.msrb.mxu1 %v488_v19  ;;  %v540_v62 = vand.u32 4294901760, %v1078_v57  ;;  %v1093_v3 = vand.u32 4294901760, %v422_v60  ;;  %v546_v13 = vand.u32 4294901760, %v1091_v0 }
  0x2a   :  { %380 = vmatpush.msra.mxu2 %v287_v53  ;;  %290 = vmatpush.msrb.mxu3 %v289_v61  ;;  %v1068_v53 = vsub.f32 %v425_v42, %v1053_v47 }
  0x2b   :  { %292 = vmatmul.f32.vlgmr.msrb.gmra.mxu3 %v857_v16  ;;  %495 = vmatpush.msrb.mxu1 %v494_v25  ;;  %v1109_v14 = vsub.f32 %v422_v60, %v1093_v3  ;;  %v547_v25 = vsub.f32 %v1091_v0, %v546_v13 }
  0x2c   :  { %399 = vmatpush.msra.mxu3 %v849_v12  ;;  %581 = vmatpush.msrb.mxu2 %v935_v1  ;;  %v430_v12 = vld [vmem:[%s1205_s4 + $0x58] sm:$0xff]  ;;  %v534_v59 = vand.u32 4294901760, %v1068_v53 }
  0x2d   :  { %v980_v17 = vand.u32 4294901760, %v430_v12 }
  0x2e   :  { %401 = vmatpush.msra.mxu3 %v868_v22  ;;  %584 = vmatpush.msrb.mxu2 %v946_v5  ;;  %v990_v22 = vand.u32 4294901760, %v429_v18 }
  0x2f   :  { %v994_v23 = vsub.f32 %v430_v12, %v980_v17  ;;  %446 = vmatpush.msrb.mxu0 %v980_v17  ;;  %v541_v12 = vsub.f32 %v1078_v57, %v540_v62 }
  0x30   :  { %403 = vmatpush.msra.mxu3 %v880_v30  ;;  %587 = vmatpush.msrb.mxu2 %v961_v10  ;;  %v1005_v27 = vsub.f32 %v429_v18, %v990_v22  ;;  %v427_v30 = vld [vmem:[%s1205_s4 + $0x40] sm:$0xff]  ;;  %v1111_v18 = vand.u32 4294901760, %v421_v8 }
  0x31   :  { %382 = vmatmul.f32.vlgmr.msra.gmra.mxu2 %v857_v16  ;;  %v504_v29 = vand.u32 4294901760, %v994_v23  ;;  %448 = vmatpush.msrb.mxu0 %v990_v22  ;;  %v1019_v34 = vand.u32 4294901760, %v427_v30  ;;  %v542_v24 = vand.u32 4294901760, %v541_v12 }
  0x32   :  { %405 = vmatpush.msra.mxu3 %v889_v36  ;;  %v510_v32 = vand.u32 4294901760, %v1005_v27  ;;  %v426_v36 = vld [vmem:[%s1205_s4 + $0x38] sm:$0xff] }
  0x33   :  { %407 = vmatmul.f32.vlgmr.msra.gmra.mxu3 %v857_v16  ;;  %v976_v16 = vsub.f32 %v431_v7, %v963_v11  ;;  %v505_v35 = vsub.f32 %v994_v23, %v504_v29  ;;  %450 = vmatpush.msrb.mxu0 %v1007_v28  ;;  %v1035_v39 = vsub.f32 %v427_v30, %v1019_v34  ;;  %v1037_v40 = vand.u32 4294901760, %v426_v36 }
  0x34   :  { %634 = vmatpush.msrb.mxu3 %v929_v63  ;;  %v511_v37 = vsub.f32 %v1005_v27, %v510_v32  ;;  %v535_v7 = vsub.f32 %v1068_v53, %v534_v59  ;;  %v1124_v30 = vsub.f32 %v421_v8, %v1111_v18 }
  0x35   :  { %v498_v21 = vand.u32 4294901760, %v976_v16  ;;  %590 = vmatpush.msrb.mxu2 %v976_v16  ;;  %v506_v41 = vand.u32 4294901760, %v505_v35  ;;  %452 = vmatpush.msrb.mxu0 %v1019_v34  ;;  %v522_v45 = vand.u32 4294901760, %v1035_v39  ;;  %v1050_v46 = vsub.f32 %v426_v36, %v1037_v40  ;;  %v419_v35 = vld [vmem:[%s1205_s4] sm:$0xff] }
  0x36   :  { %636 = vmatpush.msrb.mxu3 %v937_v2  ;;  %v512_v43 = vand.u32 4294901760, %v511_v37  ;;  %v536_v19 = vand.u32 4294901760, %v535_v7  ;;  %v548_v36 = vand.u32 4294901760, %v547_v25  ;;  %v1138_v42 = vand.u32 4294901760, %v419_v35 }
  0x37   :  { %v499_v26 = vsub.f32 %v976_v16, %v498_v21  ;;  %593 = vmatpush.msrb.mxu2 %v994_v23  ;;  %454 = vmatpush.msrb.mxu0 %v1037_v40  ;;  %v523_v50 = vsub.f32 %v1035_v39, %v522_v45  ;;  %v528_v51 = vand.u32 4294901760, %v1050_v46 }
  0x38   :  { %638 = vmatpush.msrb.mxu3 %v948_v6 }
  0x39   :  { %v500_v31 = vand.u32 4294901760, %v499_v26  ;;  %596 = vmatpush.msrb.mxu2 %v1005_v27  ;;  %456 = vmatpush.msrb.mxu0 %v1053_v47  ;;  %v524_v55 = vand.u32 4294901760, %v523_v50  ;;  %v529_v56 = vsub.f32 %v1050_v46, %v528_v51  ;;  %v552_v26 = vand.u32 4294901760, %v1109_v14 }
  0x3a   :  { %640 = vmatpush.msrb.mxu3 %v963_v11 }
  0x3b   :  { %501 = vmatpush.msrb.mxu1 %v500_v31  ;;  %599 = vmatpush.msrb.mxu2 %v1017_v33  ;;  %v530_v61 = vand.u32 4294901760, %v529_v56  ;;  %v1128_v31 = vand.u32 4294901760, %v420_v20  ;;  %v553_v37 = vsub.f32 %v1109_v14, %v552_v26 }
  0x3c   :  { %642 = vmatpush.msrb.mxu3 %v980_v17  ;;  %458 = vmatpush.msrb.mxu0 %v1063_v52 }
  0x3d   :  { %507 = vmatpush.msrb.mxu1 %v506_v41  ;;  %602 = vmatpush.msrb.mxu2 %v1035_v39  ;;  %v558_v41 = vand.u32 4294901760, %v1124_v30  ;;  %v554_v44 = vand.u32 4294901760, %v553_v37 }
  0x3e   :  { %644 = vmatpush.msrb.mxu3 %v990_v22  ;;  %460 = vmatpush.msrb.mxu0 %v1080_v58 }
  0x3f   :  { %513 = vmatpush.msrb.mxu1 %v512_v43  ;;  %605 = vmatpush.msrb.mxu2 %v1050_v46  ;;  %v563_v43 = vsub.f32 %v420_v20, %v1128_v31  ;;  %v559_v48 = vsub.f32 %v1124_v30, %v558_v41 }
  0x40   :  { %646 = vmatpush.msrb.mxu3 %v1007_v28  ;;  %462 = vmatpush.msrb.mxu0 %v1093_v3 }
  0x41   :  { %519 = vmatpush.msrb.mxu1 %v518_v49  ;;  %608 = vmatpush.msrb.mxu2 %v1068_v53  ;;  %v569_v49 = vsub.f32 %v419_v35, %v1138_v42  ;;  %v564_v50 = vand.u32 4294901760, %v563_v43  ;;  %v560_v54 = vand.u32 4294901760, %v559_v48 }
  0x42   :  { %648 = vmatpush.msrb.mxu3 %v1019_v34  ;;  %464 = vmatpush.msrb.mxu0 %v1111_v18 }
  0x43   :  { %525 = vmatpush.msrb.mxu1 %v524_v55  ;;  %611 = vmatpush.msrb.mxu2 %v1078_v57  ;;  %v570_v55 = vand.u32 4294901760, %v569_v49  ;;  %v565_v56 = vsub.f32 %v563_v43, %v564_v50 }
  0x44   :  { %650 = vmatpush.msrb.mxu3 %v1037_v40  ;;  %466 = vmatpush.msrb.mxu0 %v1128_v31 }
  0x45   :  { %531 = vmatpush.msrb.mxu1 %v530_v61  ;;  %614 = vmatpush.msrb.mxu2 %v1091_v0  ;;  %v571_v60 = vsub.f32 %v569_v49, %v570_v55  ;;  %v566_v61 = vand.u32 4294901760, %v565_v56 }
  0x46   :  { %652 = vmatpush.msrb.mxu3 %v1053_v47  ;;  %468 = vmatpush.msrb.mxu0 %v1138_v42 }
  0x47   :  { %537 = vmatpush.msrb.mxu1 %v536_v19  ;;  %617 = vmatpush.msrb.mxu2 %v1109_v14  ;;  %v572_v7 = vand.u32 4294901760, %v571_v60 }
  0x48   :  { %654 = vmatpush.msrb.mxu3 %v1063_v52  ;;  %675 = vmatpush.msra.mxu0 %v480_v4 }
  0x49   :  { %543 = vmatpush.msrb.mxu1 %v542_v24  ;;  %620 = vmatpush.msrb.mxu2 %v1124_v30 }
  0x4a   :  { %656 = vmatpush.msrb.mxu3 %v1080_v58  ;;  %679 = vmatpush.msra.mxu0 %v486_v9 }
  0x4b   :  { %549 = vmatpush.msrb.mxu1 %v548_v36  ;;  %623 = vmatpush.msrb.mxu2 %v563_v43 }
  0x4c   :  { %658 = vmatpush.msrb.mxu3 %v1093_v3  ;;  %683 = vmatpush.msra.mxu0 %v492_v15 }
  0x4d   :  { %555 = vmatpush.msrb.mxu1 %v554_v44  ;;  %626 = vmatpush.msrb.mxu2 %v569_v49 }
  0x4e   :  { %660 = vmatpush.msrb.mxu3 %v1111_v18  ;;  %687 = vmatpush.msra.mxu0 %v498_v21 }
  0x4f   :  { %561 = vmatpush.msrb.mxu1 %v560_v54 }
  0x50   :  { %662 = vmatpush.msrb.mxu3 %v1128_v31  ;;  %691 = vmatpush.msra.mxu0 %v504_v29 }
  0x51   :  { %567 = vmatpush.msrb.mxu1 %v566_v61 }
  0x52   :  { %664 = vmatpush.msrb.mxu3 %v1138_v42  ;;  %695 = vmatpush.msra.mxu0 %v510_v32 }
  0x53   :  { %573 = vmatpush.msrb.mxu1 %v572_v7 }
  0x54   :  { %699 = vmatpush.msra.mxu0 %v516_v38  ;;  %v784_v38 = vld [vmem:[%s1204_s3] ss:$0 sm:$0xff] }
  0x55   :  { %742 = vmatpush.msra.mxu1 %v929_v63 }
  0x56   :  { %703 = vmatpush.msra.mxu0 %v522_v45 }
  0x57   :  { %744 = vmatpush.msra.mxu1 %v937_v2 }
  0x58   :  { %707 = vmatpush.msra.mxu0 %v528_v51 }
  0x59   :  { %746 = vmatpush.msra.mxu1 %v948_v6 }
  0x5a   :  { %711 = vmatpush.msra.mxu0 %v534_v59 }
  0x5b   :  { %748 = vmatpush.msra.mxu1 %v963_v11 }
  0x5c   :  { %715 = vmatpush.msra.mxu0 %v540_v62  ;;  %v436_v62 = vstv %s1206_s5 }
  0x5d   :  { %750 = vmatpush.msra.mxu1 %v980_v17 }
  0x5e   :  { %719 = vmatpush.msra.mxu0 %v546_v13 }
  0x5f   :  { %752 = vmatpush.msra.mxu1 %v990_v22 }
  0x60   :  { %723 = vmatpush.msra.mxu0 %v552_v26 }
  0x61   :  { %754 = vmatpush.msra.mxu1 %v1007_v28 }
  0x62   :  { %727 = vmatpush.msra.mxu0 %v558_v41 }
  0x63   :  { %756 = vmatpush.msra.mxu1 %v1019_v34 }
  0x64   :  { %731 = vmatpush.msra.mxu0 %v564_v50 }
  0x65   :  { %758 = vmatpush.msra.mxu1 %v1037_v40 }
  0x66   :  { %735 = vmatpush.msra.mxu0 %v570_v55 }
  0x67   :  { %760 = vmatpush.msra.mxu1 %v1053_v47 }
  0x69   :  { %762 = vmatpush.msra.mxu1 %v1063_v52 }
  0x6b   :  { %764 = vmatpush.msra.mxu1 %v1080_v58 }
  0x6d   :  { %766 = vmatpush.msra.mxu1 %v1093_v3 }
  0x6f   :  { %768 = vmatpush.msra.mxu1 %v1111_v18 }
  0x71   :  { %770 = vmatpush.msra.mxu1 %v1128_v31 }
  0x73   :  { %772 = vmatpush.msra.mxu1 %v1138_v42 }
  0x8a   :  { %v350_v28 = vpop.f32.mrf.mxu1 }
  0x8e   :  { %v323_v23 = vpop.f32.mrf.mxu0 }
  0x94   :  { %v64_v1 = vpop.f32.mrf.mxu2 }
  0x96   :  { %v105_v4 = vpop.f32.mrf.mxu3 }
  0x97   :  { %v106_v5 = vadd.f32 %v105_v4, %v64_v1 }
  0x9c   :  { %v135_v63 = vpop.f32.mrf.mxu2 }
  0x9d   :  { %v136_v9 = vadd.f32 %v135_v63, %v106_v5 }
  0x9e   :  { %v162_v2 = vpop.f32.mrf.mxu3 }
  0x9f   :  { %v163_v11 = vadd.f32 %v162_v2, %v136_v9 }
  0xa4   :  { %v195_v6 = vpop.f32.mrf.mxu2 }
  0xa5   :  { %v196_v15 = vadd.f32 %v195_v6, %v163_v11 }
  0xa6   :  { %v220_v10 = vpop.f32.mrf.mxu3 }
  0xa7   :  { %v221_v16 = vadd.f32 %v220_v10, %v196_v15 }
  0xac   :  { %v252_v17 = vpop.f32.mrf.mxu2 }
  0xad   :  { %v253_v21 = vadd.f32 %v252_v17, %v221_v16 }
  0xae   :  { %v293_v22 = vpop.f32.mrf.mxu3 }
  0xaf   :  { %v294_v27 = vadd.f32 %v293_v22, %v253_v21 }
  0xb1   :  { %v324_v29 = vadd.f32 %v323_v23, %v294_v27 }
  0xb3   :  { %v351_v32 = vadd.f32 %v350_v28, %v324_v29 }
  0xb4   :  { %v383_v33 = vpop.f32.mrf.mxu2 }
  0xb5   :  { %v384_v34 = vadd.f32 %v383_v33, %v351_v32 }
  0xb6   :  { %v408_v39 = vpop.f32.mrf.mxu3 }
  0xb7   :  { %v409_v40 = vadd.f32 %v408_v39, %v384_v34 }
  0xb9   :  { %v415_v45 = vadd.f32 %v784_v38, %v409_v40 }
  0xbb   :  { %v416_v46 = vmin.f32 %v415_v45, 0.0 }
  0xbd   :  { %v417_v47 = vmul.f32 1.442695, %v416_v46 }
  0xbf   :  { %785 = vpow2.f32 %v417_v47 }
  0xc5   :  { %v786_v51 = vpop.eup %785 }
  0xc6   :  { %v469_v52 = vand.u32 4294901760, %v786_v51 }
  0xc8   :  { %575 = vmatmul.f32.vlgmr.msrb.gmra.mxu1 %v469_v52  ;;  %v470_v53 = vsub.f32 %v786_v51, %v469_v52 }
  0xca   :  { %629 = vmatmul.f32.vlgmr.msrb.gmra.mxu2 %v470_v53  ;;  %v471_v57 = vand.u32 4294901760, %v470_v53 }
  0xcc   :  { %668 = vmatmul.f32.vlgmr.msrb.gmra.mxu3 %v471_v57  ;;  %v472_v58 = vsub.f32 %v470_v53, %v471_v57 }
  0xce   :  { %v473_v59 = vand.u32 4294901760, %v472_v58 }
  0xd0   :  { %474 = vmatmul.f32.vlgmr.msrb.gmra.mxu0 %v473_v59  ;;  %774 = vmatmul.f32.vlgmr.msra.gmra.mxu1 %v469_v52 }
  0xd8   :  { %737 = vmatmul.f32.vlgmr.msra.gmra.mxu0 %v469_v52 }
 0x145   :  { %v576_v0 = vpop.f32.mrf.mxu1 }
 0x14d   :  { %v475_v3 = vpop.f32.mrf.mxu0  ;;  %v630_v13 = vpop.f32.mrf.mxu2 }
 0x14e   :  { %v476_v8 = vadd.f32 %v475_v3, %v436_v62  ;;  %v775_v25 = vpop.f32.mrf.mxu1 }
 0x14f   :  { %v669_v18 = vpop.f32.mrf.mxu3 }
 0x150   :  { %v577_v12 = vadd.f32 %v576_v0, %v476_v8 }
 0x152   :  { %v631_v14 = vadd.f32 %v630_v13, %v577_v12 }
 0x154   :  { %v670_v19 = vadd.f32 %v669_v18, %v631_v14 }
 0x155   :  { %v738_v20 = vpop.f32.mrf.mxu0 }
 0x156   :  { %v739_v24 = vadd.f32 %v738_v20, %v670_v19 }
 0x158   :  { %v776_v26 = vadd.f32 %v775_v25, %v739_v24 }
 0x15a   :  { %779 = vst.msk [vmem:[%s1207_s6] sm:$0xff] %vm778_vm1, %v776_v26 }

</bundles_post_ra>
